<compile_context>
chip_gen: v6e
topology: v6e:2x2x1
jax: 0.10.0
libtpu: 0.0.40
codegen_flags: <defaults>
</compile_context>

<pallas_src>
import functools

import jax
import jax.numpy as jnp
from jax.experimental import pallas as pl
from jax.experimental.pallas import tpu as pltpu


def _sigmoid(x):
    # exact logistic; pl.reciprocal keeps the divide off the VALU path
    return pl.reciprocal(1.0 + jnp.exp(-x))


def _softplus(x):
    # numerically stable log(1 + exp(x)) using only exp/log/abs/max
    return jnp.maximum(x, 0.0) + jnp.log(1.0 + jnp.exp(-jnp.abs(x)))


def write_head_seq_kernel(emb_ref, wprev_ref, mem_in_ref, W_ref, b_ref,
                          w_seq_ref, mem_out_ref, w_carry):
    """One NTM write-head step per grid iteration; memory/w carried in VMEM."""
    t = pl.program_id(0)

    # Initialize the resident carries once.  mem_out has a constant index_map,
    # so it lives in VMEM for the whole grid and is written to HBM only after
    # the final timestep.
    @pl.when(t == 0)
    def _init():
        w_carry[...] = wprev_ref[...]
        mem_out_ref[...] = mem_in_ref[...]

    emb = emb_ref[0]              # (B, C)
    w_prev = w_carry[...]         # (B, N)
    mem = mem_out_ref[...]        # (B, N, M)
    W = W_ref[...]                # (C, L)
    b = b_ref[...]                # (1, L)
    M = mem.shape[-1]
    N = mem.shape[-2]

    # fc(embeddings): tiny MXU matmul, bias folded into the epilogue.
    o = jnp.dot(emb, W, preferred_element_type=jnp.float32) + b   # (B, L)

    # _split_cols(o, [M, 1, 1, 3, 1, M, M])
    k     = o[:, 0:M]
    beta  = o[:, M:M + 1]
    g     = o[:, M + 1:M + 2]
    s     = o[:, M + 2:M + 5]
    gamma = o[:, M + 5:M + 6]
    e     = o[:, M + 6:2 * M + 6]
    a     = o[:, 2 * M + 6:3 * M + 6]

    e = _sigmoid(e)                       # erase vector
    beta = _softplus(beta)                # key strength
    g = _sigmoid(g)                       # interpolation gate
    gamma = 1.0 + _softplus(gamma)        # sharpening exponent

    # softmax over the 3-wide shift distribution
    s = s - jnp.max(s, axis=1, keepdims=True)
    s = jnp.exp(s)
    s = s * pl.reciprocal(jnp.sum(s, axis=1, keepdims=True))

    # ---- memory.address(k, beta, g, s, gamma, w_prev) ----
    # content addressing: cosine similarity (torch eps = 1e-8, +1e-16 offsets)
    mem_e = mem + 1e-16                          # (B, N, M)
    k_e = k[:, None, :] + 1e-16                  # (B, 1, M)
    num = jnp.sum(mem_e * k_e, axis=-1)                      # (B, N)
    mem_norm = jnp.sqrt(jnp.sum(mem_e * mem_e, axis=-1))     # (B, N)
    k_norm = jnp.sqrt(jnp.sum(k_e * k_e, axis=-1))           # (B, 1)
    den = jnp.maximum(mem_norm, 1e-8) * jnp.maximum(k_norm, 1e-8)
    sim = num * pl.reciprocal(den)

    logits = beta * sim                          # (B, N)
    logits = logits - jnp.max(logits, axis=1, keepdims=True)
    wc = jnp.exp(logits)
    wc = wc * pl.reciprocal(jnp.sum(wc, axis=1, keepdims=True))

    # interpolate with previous weights
    wg = g * wc + (1.0 - g) * w_prev             # (B, N)

    # circular 3-tap shift: c[i] = s0*w[i-1] + s1*w[i] + s2*w[i+1]  (mod N)
    wg_pad = jnp.concatenate([wg[:, N - 1:N], wg, wg[:, 0:1]], axis=1)  # (B, N+2)
    w_sh = (s[:, 0:1] * wg_pad[:, 0:N] +
            s[:, 1:2] * wg_pad[:, 1:N + 1] +
            s[:, 2:3] * wg_pad[:, 2:N + 2])

    # sharpen: w = w_sh ** gamma / (sum + 1e-16)   (w_sh >= 0 by construction)
    w_pow = jnp.where(
        w_sh > 0.0,
        jnp.exp(gamma * jnp.log(jnp.maximum(w_sh, 1e-38))),
        0.0,
    )
    w = w_pow * pl.reciprocal(jnp.sum(w_pow, axis=1, keepdims=True) + 1e-16)

    # ---- memory.write(w, e, a): erase then add (outer products) ----
    erase = w[:, :, None] * e[:, None, :]        # (B, N, M)
    add = w[:, :, None] * a[:, None, :]          # (B, N, M)
    mem_out_ref[...] = mem * (1.0 - erase) + add

    w_seq_ref[0] = w
    w_carry[...] = w


def _build_sequence_call(T, B, C, N, M, L):
    grid_spec = pltpu.PrefetchScalarGridSpec(
        num_scalar_prefetch=0,
        grid=(T,),
        in_specs=[
            pl.BlockSpec((1, B, C), lambda t: (t, 0, 0)),    # embeddings[t]
            pl.BlockSpec((B, N), lambda t: (0, 0)),          # w_prev (resident)
            pl.BlockSpec((B, N, M), lambda t: (0, 0, 0)),    # memory (resident)
            pl.BlockSpec((C, L), lambda t: (0, 0)),          # fc weight (resident)
            pl.BlockSpec((1, L), lambda t: (0, 0)),          # fc bias (resident)
        ],
        out_specs=(
            pl.BlockSpec((1, B, N), lambda t: (t, 0, 0)),    # w at each step
            pl.BlockSpec((B, N, M), lambda t: (0, 0, 0)),    # final memory (resident acc)
        ),
        scratch_shapes=[pltpu.VMEM((B, N), jnp.float32)],    # w carry across steps
    )
    return pl.pallas_call(
        write_head_seq_kernel,
        out_shape=(
            jax.ShapeDtypeStruct((T, B, N), jnp.float32),
            jax.ShapeDtypeStruct((B, N, M), jnp.float32),
        ),
        grid_spec=grid_spec,
        # Donate the incoming memory HBM buffer to the memory output.
        input_output_aliases={2: 1},
        compiler_params=pltpu.CompilerParams(
            dimension_semantics=("arbitrary",),   # sequential carry over time
        ),
    )


@functools.partial(jax.jit, donate_argnums=(2,))
def write_head_sequence(emb_seq, w_prev, memory, W, b):
    """Fused T-step NTM write: one pallas_call for the whole time loop."""
    T, B, C = emb_seq.shape
    _, N, M = memory.shape
    L = W.shape[1]
    call = _build_sequence_call(T, B, C, N, M, L)
    return call(emb_seq, w_prev, memory, W, b.reshape(1, L))


def write_head_forward(embeddings, w_prev, memory, W, b):
    """Single-step forward matching WriteHead.forward (T == 1).

    NOTE: `memory` is donated (aliased to the memory output)."""
    w_seq, mem_new = write_head_sequence(embeddings[None], w_prev, memory, W, b)
    return w_seq[0], mem_new


def write_head_reference(embeddings, w_prev, memory, W, b):
    """Pure-JAX single-step reference for correctness checking."""
    M = memory.shape[-1]
    o = embeddings @ W + b
    k, beta, g, s, gamma, e, a = (
        o[:, 0:M], o[:, M:M + 1], o[:, M + 1:M + 2], o[:, M + 2:M + 5],
        o[:, M + 5:M + 6], o[:, M + 6:2 * M + 6], o[:, 2 * M + 6:3 * M + 6])
    e = jax.nn.sigmoid(e)
    beta = jax.nn.softplus(beta)
    g = jax.nn.sigmoid(g)
    s = jax.nn.softmax(s, axis=1)
    gamma = 1.0 + jax.nn.softplus(gamma)

    mem_e = memory + 1e-16
    k_e = k[:, None, :] + 1e-16
    num = jnp.sum(mem_e * k_e, axis=-1)
    den = (jnp.maximum(jnp.linalg.norm(mem_e, axis=-1), 1e-8) *
           jnp.maximum(jnp.linalg.norm(k_e, axis=-1), 1e-8))
    wc = jax.nn.softmax(beta * (num / den), axis=1)
    wg = g * wc + (1.0 - g) * w_prev
    w_sh = (s[:, 0:1] * jnp.roll(wg, 1, axis=1) + s[:, 1:2] * wg +
            s[:, 2:3] * jnp.roll(wg, -1, axis=1))
    w_pow = w_sh ** gamma
    w = w_pow / (jnp.sum(w_pow, axis=1, keepdims=True) + 1e-16)
    erase = w[:, :, None] * e[:, None, :]
    add = w[:, :, None] * a[:, None, :]
    return w, memory * (1.0 - erase) + add


if __name__ == "__main__":
    # Small shapes consistent with the module.
    B, C = 2, 32          # batch, controller_size
    N, M = 16, 8          # memory rows, memory width
    L = 3 * M + 6         # sum(write_lengths) = M+1+1+3+1+M+M
    T = 8                 # fused timesteps

    key = jax.random.PRNGKey(0)
    k_w, k_b, k_emb, k_wprev, k_mem, k_seq = jax.random.split(key, 6)

    # Deterministic parameter init mirroring the module's __init__:
    #   xavier_uniform_(gain=1.4) on the (L, C) torch weight  -> stored as (C, L)
    #   normal_(std=0.01) bias
    bound = 1.4 * jnp.sqrt(6.0 / (C + L))
    W = jax.random.uniform(k_w, (C, L), jnp.float32, minval=-bound, maxval=bound)
    b = 0.01 * jax.random.normal(k_b, (L,), jnp.float32)

    embeddings = jax.random.normal(k_emb, (B, C), jnp.float32)
    w_prev = jax.nn.softmax(jax.random.normal(k_wprev, (B, N), jnp.float32), axis=1)
    memory = 0.1 * jax.random.normal(k_mem, (B, N, M), jnp.float32)

    # ---- single step: matches WriteHead.forward ----
    w_ref1, mem_ref1 = write_head_reference(embeddings, w_prev, memory, W, b)
    # kernel donates its memory argument, so hand it a throwaway copy
    w1, mem1 = write_head_forward(embeddings, w_prev, memory + 0.0, W, b)
    jax.block_until_ready((w1, mem1))
    assert jnp.allclose(w1, w_ref1, atol=1e-5, rtol=1e-5)
    assert jnp.allclose(mem1, mem_ref1, atol=1e-5, rtol=1e-5)

    # ---- fused T-step sequence: one pallas_call for the whole write loop ----
    emb_seq = jax.random.normal(k_seq, (T, B, C), jnp.float32)
    w_t, mem_t = w_prev, memory
    w_list = []
    for t in range(T):
        w_t, mem_t = write_head_reference(emb_seq[t], w_t, mem_t, W, b)
        w_list.append(w_t)
    w_seq_expected = jnp.stack(w_list, axis=0)

    w_seq, mem_final = write_head_sequence(emb_seq, w_prev, memory + 0.0, W, b)
    jax.block_until_ready((w_seq, mem_final))
    assert jnp.allclose(w_seq, w_seq_expected, atol=1e-4, rtol=1e-4)
    assert jnp.allclose(mem_final, mem_t, atol=1e-4, rtol=1e-4)

    print("KERNEL_OK")
</pallas_src>

<mosaic_0001>
module attributes {stable_mosaic.version = 11 : i64} {
  func.func @write_head_seq_kernel(%arg0: i32, %arg1: memref<1x2x32xf32, #tpu.memory_space<vmem>>, %arg2: memref<2x16xf32, #tpu.memory_space<vmem>>, %arg3: memref<2x16x8xf32, #tpu.memory_space<vmem>>, %arg4: memref<32x30xf32, #tpu.memory_space<vmem>>, %arg5: memref<1x30xf32, #tpu.memory_space<vmem>>, %arg6: memref<1x2x16xf32, #tpu.memory_space<vmem>>, %arg7: memref<2x16x8xf32, #tpu.memory_space<vmem>>, %arg8: memref<2x16xf32, #tpu.memory_space<vmem>>) attributes {dimension_semantics = [#tpu.dimension_semantics<arbitrary>], iteration_bounds = array<i64: 1>, scalar_prefetch = 0 : i64, scratch_operands = 1 : i64, tpu.core_type = #tpu.core_type<tc>, window_params = [{transform_indices = @transform_0, window_bounds = array<i64: 1, 2, 32>}, {pipeline_mode = #tpu.pipeline_mode<synchronous>, transform_indices = @transform_1, window_bounds = array<i64: 2, 16>}, {pipeline_mode = #tpu.pipeline_mode<synchronous>, transform_indices = @transform_2, window_bounds = array<i64: 2, 16, 8>}, {pipeline_mode = #tpu.pipeline_mode<synchronous>, transform_indices = @transform_3, window_bounds = array<i64: 32, 30>}, {pipeline_mode = #tpu.pipeline_mode<synchronous>, transform_indices = @transform_4, window_bounds = array<i64: 1, 30>}, {transform_indices = @transform_5, window_bounds = array<i64: 1, 2, 16>}, {pipeline_mode = #tpu.pipeline_mode<synchronous>, transform_indices = @transform_6, window_bounds = array<i64: 2, 16, 8>}]} {
    %c0_i32 = arith.constant 0 : i32
    %0 = arith.cmpi eq, %arg0, %c0_i32 : i32
    %1 = arith.extui %0 : i1 to i32
    %c0_i32_0 = arith.constant 0 : i32
    %2 = arith.cmpi ne, %1, %c0_i32_0 : i32
    scf.if %2 {
      %c0_49 = arith.constant 0 : index
      %c0_50 = arith.constant 0 : index
      %157 = vector.load %arg2[%c0_49, %c0_50] : memref<2x16xf32, #tpu.memory_space<vmem>>, vector<2x16xf32>
      %c0_51 = arith.constant 0 : index
      %c0_52 = arith.constant 0 : index
      %158 = vector.load %arg8[%c0_51, %c0_52] : memref<2x16xf32, #tpu.memory_space<vmem>>, vector<2x16xf32>
      tpu.vector_store %arg8[%c0_51, %c0_52], %157 {strides = array<i32>} : memref<2x16xf32, #tpu.memory_space<vmem>>, vector<2x16xf32>,
      %c0_53 = arith.constant 0 : index
      %c0_54 = arith.constant 0 : index
      %c0_55 = arith.constant 0 : index
      %159 = vector.load %arg3[%c0_53, %c0_54, %c0_55] : memref<2x16x8xf32, #tpu.memory_space<vmem>>, vector<2x16x8xf32>
      %c0_56 = arith.constant 0 : index
      %c0_57 = arith.constant 0 : index
      %c0_58 = arith.constant 0 : index
      %160 = vector.load %arg7[%c0_56, %c0_57, %c0_58] : memref<2x16x8xf32, #tpu.memory_space<vmem>>, vector<2x16x8xf32>
      tpu.vector_store %arg7[%c0_56, %c0_57, %c0_58], %159 {strides = array<i32>} : memref<2x16x8xf32, #tpu.memory_space<vmem>>, vector<2x16x8xf32>,
    } else {
    }
    %c0 = arith.constant 0 : index
    %c0_1 = arith.constant 0 : index
    %c0_2 = arith.constant 0 : index
    %3 = vector.load %arg1[%c0, %c0_1, %c0_2] : memref<1x2x32xf32, #tpu.memory_space<vmem>>, vector<1x2x32xf32>
    %4 = vector.shape_cast %3 : vector<1x2x32xf32> to vector<2x32xf32>
    %c0_3 = arith.constant 0 : index
    %c0_4 = arith.constant 0 : index
    %5 = vector.load %arg8[%c0_3, %c0_4] : memref<2x16xf32, #tpu.memory_space<vmem>>, vector<2x16xf32>
    %c0_5 = arith.constant 0 : index
    %c0_6 = arith.constant 0 : index
    %c0_7 = arith.constant 0 : index
    %6 = vector.load %arg7[%c0_5, %c0_6, %c0_7] : memref<2x16x8xf32, #tpu.memory_space<vmem>>, vector<2x16x8xf32>
    %c0_8 = arith.constant 0 : index
    %c0_9 = arith.constant 0 : index
    %7 = vector.load %arg4[%c0_8, %c0_9] : memref<32x30xf32, #tpu.memory_space<vmem>>, vector<32x30xf32>
    %c0_10 = arith.constant 0 : index
    %c0_11 = arith.constant 0 : index
    %8 = vector.load %arg5[%c0_10, %c0_11] : memref<1x30xf32, #tpu.memory_space<vmem>>, vector<1x30xf32>
    %cst = arith.constant dense<0.000000e+00> : vector<2x30xf32>
    %9 = tpu.matmul %4, %7, %cst {dimension_numbers = #tpu.dot_dimension_numbers<[1], [0], [0], [1], [0, 0, 1, 1], [], []>} : vector<2x32xf32>, vector<32x30xf32>, vector<2x30xf32> -> vector<2x30xf32>
    %10 = vector.broadcast %8 : vector<1x30xf32> to vector<2x30xf32>
    %11 = arith.addf %9, %10 : vector<2x30xf32>
    %12 = vector.extract_strided_slice %11 {offsets = [0, 0], sizes = [2, 8], strides = [1, 1]} : vector<2x30xf32> to vector<2x8xf32>
    %13 = vector.extract_strided_slice %11 {offsets = [0, 8], sizes = [2, 1], strides = [1, 1]} : vector<2x30xf32> to vector<2x1xf32>
    %14 = vector.extract_strided_slice %11 {offsets = [0, 9], sizes = [2, 1], strides = [1, 1]} : vector<2x30xf32> to vector<2x1xf32>
    %15 = vector.extract_strided_slice %11 {offsets = [0, 10], sizes = [2, 3], strides = [1, 1]} : vector<2x30xf32> to vector<2x3xf32>
    %16 = vector.extract_strided_slice %11 {offsets = [0, 13], sizes = [2, 1], strides = [1, 1]} : vector<2x30xf32> to vector<2x1xf32>
    %17 = vector.extract_strided_slice %11 {offsets = [0, 14], sizes = [2, 8], strides = [1, 1]} : vector<2x30xf32> to vector<2x8xf32>
    %18 = vector.extract_strided_slice %11 {offsets = [0, 22], sizes = [2, 8], strides = [1, 1]} : vector<2x30xf32> to vector<2x8xf32>
    %cst_12 = arith.constant 0.000000e+00 : f32
    %19 = vector.broadcast %cst_12 : f32 to vector<2x8xf32>
    %20 = arith.subf %19, %17 : vector<2x8xf32>
    %21 = math.exp %20 : vector<2x8xf32>
    %cst_13 = arith.constant 1.000000e+00 : f32
    %22 = vector.broadcast %cst_13 : f32 to vector<2x8xf32>
    %23 = arith.addf %22, %21 : vector<2x8xf32>
    %24 = tpu.reciprocal %23 : vector<2x8xf32> -> vector<2x8xf32>
    %cst_14 = arith.constant 0.000000e+00 : f32
    %25 = vector.broadcast %cst_14 : f32 to vector<2x1xf32>
    %26 = arith.maximumf %13, %25 : vector<2x1xf32>
    %27 = math.absf %13 : vector<2x1xf32>
    %cst_15 = arith.constant 0.000000e+00 : f32
    %28 = vector.broadcast %cst_15 : f32 to vector<2x1xf32>
    %29 = arith.subf %28, %27 : vector<2x1xf32>
    %30 = math.exp %29 : vector<2x1xf32>
    %cst_16 = arith.constant 1.000000e+00 : f32
    %31 = vector.broadcast %cst_16 : f32 to vector<2x1xf32>
    %32 = arith.addf %31, %30 : vector<2x1xf32>
    %33 = math.log %32 : vector<2x1xf32>
    %34 = arith.addf %26, %33 : vector<2x1xf32>
    %cst_17 = arith.constant 0.000000e+00 : f32
    %35 = vector.broadcast %cst_17 : f32 to vector<2x1xf32>
    %36 = arith.subf %35, %14 : vector<2x1xf32>
    %37 = math.exp %36 : vector<2x1xf32>
    %cst_18 = arith.constant 1.000000e+00 : f32
    %38 = vector.broadcast %cst_18 : f32 to vector<2x1xf32>
    %39 = arith.addf %38, %37 : vector<2x1xf32>
    %40 = tpu.reciprocal %39 : vector<2x1xf32> -> vector<2x1xf32>
    %cst_19 = arith.constant 0.000000e+00 : f32
    %41 = vector.broadcast %cst_19 : f32 to vector<2x1xf32>
    %42 = arith.maximumf %16, %41 : vector<2x1xf32>
    %43 = math.absf %16 : vector<2x1xf32>
    %cst_20 = arith.constant 0.000000e+00 : f32
    %44 = vector.broadcast %cst_20 : f32 to vector<2x1xf32>
    %45 = arith.subf %44, %43 : vector<2x1xf32>
    %46 = math.exp %45 : vector<2x1xf32>
    %cst_21 = arith.constant 1.000000e+00 : f32
    %47 = vector.broadcast %cst_21 : f32 to vector<2x1xf32>
    %48 = arith.addf %47, %46 : vector<2x1xf32>
    %49 = math.log %48 : vector<2x1xf32>
    %50 = arith.addf %42, %49 : vector<2x1xf32>
    %cst_22 = arith.constant 1.000000e+00 : f32
    %51 = vector.broadcast %cst_22 : f32 to vector<2x1xf32>
    %52 = arith.addf %51, %50 : vector<2x1xf32>
    %cst_23 = arith.constant dense<0xFF800000> : vector<2xf32>
    %53 = vector.multi_reduction <maximumf>, %15, %cst_23 [1] : vector<2x3xf32> to vector<2xf32>
    %54 = vector.shape_cast %53 : vector<2xf32> to vector<2x1xf32>
    %55 = vector.broadcast %54 : vector<2x1xf32> to vector<2x3xf32>
    %56 = arith.subf %15, %55 : vector<2x3xf32>
    %57 = math.exp %56 : vector<2x3xf32>
    %cst_24 = arith.constant dense<0.000000e+00> : vector<2xf32>
    %58 = vector.multi_reduction <add>, %57, %cst_24 [1] : vector<2x3xf32> to vector<2xf32>
    %59 = vector.shape_cast %58 : vector<2xf32> to vector<2x1xf32>
    %60 = tpu.reciprocal %59 : vector<2x1xf32> -> vector<2x1xf32>
    %61 = vector.broadcast %60 : vector<2x1xf32> to vector<2x3xf32>
    %62 = arith.mulf %57, %61 : vector<2x3xf32>
    %cst_25 = arith.constant 1.000000e-16 : f32
    %63 = vector.broadcast %cst_25 : f32 to vector<2x16x8xf32>
    %64 = arith.addf %6, %63 : vector<2x16x8xf32>
    %65 = vector.shape_cast %12 : vector<2x8xf32> to vector<2x1x8xf32>
    %cst_26 = arith.constant 1.000000e-16 : f32
    %66 = vector.broadcast %cst_26 : f32 to vector<2x1x8xf32>
    %67 = arith.addf %65, %66 : vector<2x1x8xf32>
    %68 = vector.broadcast %67 : vector<2x1x8xf32> to vector<2x16x8xf32>
    %69 = arith.mulf %64, %68 : vector<2x16x8xf32>
    %cst_27 = arith.constant dense<0.000000e+00> : vector<2x16xf32>
    %70 = vector.multi_reduction <add>, %69, %cst_27 [2] : vector<2x16x8xf32> to vector<2x16xf32>
    %71 = arith.mulf %64, %64 : vector<2x16x8xf32>
    %cst_28 = arith.constant dense<0.000000e+00> : vector<2x16xf32>
    %72 = vector.multi_reduction <add>, %71, %cst_28 [2] : vector<2x16x8xf32> to vector<2x16xf32>
    %73 = math.sqrt %72 : vector<2x16xf32>
    %74 = arith.mulf %67, %67 : vector<2x1x8xf32>
    %cst_29 = arith.constant dense<0.000000e+00> : vector<2x1xf32>
    %75 = vector.multi_reduction <add>, %74, %cst_29 [2] : vector<2x1x8xf32> to vector<2x1xf32>
    %76 = math.sqrt %75 : vector<2x1xf32>
    %cst_30 = arith.constant 9.99999993E-9 : f32
    %77 = vector.broadcast %cst_30 : f32 to vector<2x16xf32>
    %78 = arith.maximumf %73, %77 : vector<2x16xf32>
    %cst_31 = arith.constant 9.99999993E-9 : f32
    %79 = vector.broadcast %cst_31 : f32 to vector<2x1xf32>
    %80 = arith.maximumf %76, %79 : vector<2x1xf32>
    %81 = vector.broadcast %80 : vector<2x1xf32> to vector<2x16xf32>
    %82 = arith.mulf %78, %81 : vector<2x16xf32>
    %83 = tpu.reciprocal %82 : vector<2x16xf32> -> vector<2x16xf32>
    %84 = arith.mulf %70, %83 : vector<2x16xf32>
    %85 = vector.broadcast %34 : vector<2x1xf32> to vector<2x16xf32>
    %86 = arith.mulf %85, %84 : vector<2x16xf32>
    %cst_32 = arith.constant dense<0xFF800000> : vector<2xf32>
    %87 = vector.multi_reduction <maximumf>, %86, %cst_32 [1] : vector<2x16xf32> to vector<2xf32>
    %88 = vector.shape_cast %87 : vector<2xf32> to vector<2x1xf32>
    %89 = vector.broadcast %88 : vector<2x1xf32> to vector<2x16xf32>
    %90 = arith.subf %86, %89 : vector<2x16xf32>
    %91 = math.exp %90 : vector<2x16xf32>
    %cst_33 = arith.constant dense<0.000000e+00> : vector<2xf32>
    %92 = vector.multi_reduction <add>, %91, %cst_33 [1] : vector<2x16xf32> to vector<2xf32>
    %93 = vector.shape_cast %92 : vector<2xf32> to vector<2x1xf32>
    %94 = tpu.reciprocal %93 : vector<2x1xf32> -> vector<2x1xf32>
    %95 = vector.broadcast %94 : vector<2x1xf32> to vector<2x16xf32>
    %96 = arith.mulf %91, %95 : vector<2x16xf32>
    %97 = vector.broadcast %40 : vector<2x1xf32> to vector<2x16xf32>
    %98 = arith.mulf %97, %96 : vector<2x16xf32>
    %cst_34 = arith.constant 1.000000e+00 : f32
    %99 = vector.broadcast %cst_34 : f32 to vector<2x1xf32>
    %100 = arith.subf %99, %40 : vector<2x1xf32>
    %101 = vector.broadcast %100 : vector<2x1xf32> to vector<2x16xf32>
    %102 = arith.mulf %101, %5 : vector<2x16xf32>
    %103 = arith.addf %98, %102 : vector<2x16xf32>
    %104 = vector.extract_strided_slice %103 {offsets = [0, 15], sizes = [2, 1], strides = [1, 1]} : vector<2x16xf32> to vector<2x1xf32>
    %105 = vector.extract_strided_slice %103 {offsets = [0, 0], sizes = [2, 1], strides = [1, 1]} : vector<2x16xf32> to vector<2x1xf32>
    %106 = tpu.concatenate %104, %103, %105 in 1 : vector<2x1xf32>, vector<2x16xf32>, vector<2x1xf32> -> vector<2x18xf32>
    %107 = vector.extract_strided_slice %62 {offsets = [0, 0], sizes = [2, 1], strides = [1, 1]} : vector<2x3xf32> to vector<2x1xf32>
    %108 = vector.extract_strided_slice %106 {offsets = [0, 0], sizes = [2, 16], strides = [1, 1]} : vector<2x18xf32> to vector<2x16xf32>
    %109 = vector.broadcast %107 : vector<2x1xf32> to vector<2x16xf32>
    %110 = arith.mulf %109, %108 : vector<2x16xf32>
    %111 = vector.extract_strided_slice %62 {offsets = [0, 1], sizes = [2, 1], strides = [1, 1]} : vector<2x3xf32> to vector<2x1xf32>
    %112 = vector.extract_strided_slice %106 {offsets = [0, 1], sizes = [2, 16], strides = [1, 1]} : vector<2x18xf32> to vector<2x16xf32>
    %113 = vector.broadcast %111 : vector<2x1xf32> to vector<2x16xf32>
    %114 = arith.mulf %113, %112 : vector<2x16xf32>
    %115 = arith.addf %110, %114 : vector<2x16xf32>
    %116 = vector.extract_strided_slice %62 {offsets = [0, 2], sizes = [2, 1], strides = [1, 1]} : vector<2x3xf32> to vector<2x1xf32>
    %117 = vector.extract_strided_slice %106 {offsets = [0, 2], sizes = [2, 16], strides = [1, 1]} : vector<2x18xf32> to vector<2x16xf32>
    %118 = vector.broadcast %116 : vector<2x1xf32> to vector<2x16xf32>
    %119 = arith.mulf %118, %117 : vector<2x16xf32>
    %120 = arith.addf %115, %119 : vector<2x16xf32>
    %cst_35 = arith.constant 0.000000e+00 : f32
    %121 = vector.broadcast %cst_35 : f32 to vector<2x16xf32>
    %122 = arith.cmpf ogt, %120, %121 : vector<2x16xf32>
    %cst_36 = arith.constant 9.99999935E-39 : f32
    %123 = vector.broadcast %cst_36 : f32 to vector<2x16xf32>
    %124 = arith.maximumf %120, %123 : vector<2x16xf32>
    %125 = math.log %124 : vector<2x16xf32>
    %126 = vector.broadcast %52 : vector<2x1xf32> to vector<2x16xf32>
    %127 = arith.mulf %126, %125 : vector<2x16xf32>
    %128 = math.exp %127 : vector<2x16xf32>
    %cst_37 = arith.constant 0.000000e+00 : f32
    %129 = vector.broadcast %cst_37 : f32 to vector<2x16xf32>
    %130 = arith.select %122, %128, %129 : vector<2x16xi1>, vector<2x16xf32>
    %cst_38 = arith.constant dense<0.000000e+00> : vector<2xf32>
    %131 = vector.multi_reduction <add>, %130, %cst_38 [1] : vector<2x16xf32> to vector<2xf32>
    %132 = vector.shape_cast %131 : vector<2xf32> to vector<2x1xf32>
    %cst_39 = arith.constant 1.000000e-16 : f32
    %133 = vector.broadcast %cst_39 : f32 to vector<2x1xf32>
    %134 = arith.addf %132, %133 : vector<2x1xf32>
    %135 = tpu.reciprocal %134 : vector<2x1xf32> -> vector<2x1xf32>
    %136 = vector.broadcast %135 : vector<2x1xf32> to vector<2x16xf32>
    %137 = arith.mulf %130, %136 : vector<2x16xf32>
    %138 = vector.shape_cast %137 : vector<2x16xf32> to vector<2x16x1xf32>
    %139 = vector.shape_cast %24 : vector<2x8xf32> to vector<2x1x8xf32>
    %140 = vector.broadcast %138 : vector<2x16x1xf32> to vector<2x16x8xf32>
    %141 = vector.broadcast %139 : vector<2x1x8xf32> to vector<2x16x8xf32>
    %142 = arith.mulf %140, %141 : vector<2x16x8xf32>
    %143 = vector.shape_cast %137 : vector<2x16xf32> to vector<2x16x1xf32>
    %144 = vector.shape_cast %18 : vector<2x8xf32> to vector<2x1x8xf32>
    %145 = vector.broadcast %143 : vector<2x16x1xf32> to vector<2x16x8xf32>
    %146 = vector.broadcast %144 : vector<2x1x8xf32> to vector<2x16x8xf32>
    %147 = arith.mulf %145, %146 : vector<2x16x8xf32>
    %cst_40 = arith.constant 1.000000e+00 : f32
    %148 = vector.broadcast %cst_40 : f32 to vector<2x16x8xf32>
    %149 = arith.subf %148, %142 : vector<2x16x8xf32>
    %150 = arith.mulf %6, %149 : vector<2x16x8xf32>
    %151 = arith.addf %150, %147 : vector<2x16x8xf32>
    %c0_41 = arith.constant 0 : index
    %c0_42 = arith.constant 0 : index
    %c0_43 = arith.constant 0 : index
    %152 = vector.load %arg7[%c0_41, %c0_42, %c0_43] : memref<2x16x8xf32, #tpu.memory_space<vmem>>, vector<2x16x8xf32>
    tpu.vector_store %arg7[%c0_41, %c0_42, %c0_43], %151 {strides = array<i32>} : memref<2x16x8xf32, #tpu.memory_space<vmem>>, vector<2x16x8xf32>,
    %c0_44 = arith.constant 0 : index
    %c0_45 = arith.constant 0 : index
    %c0_46 = arith.constant 0 : index
    %153 = vector.load %arg6[%c0_44, %c0_45, %c0_46] : memref<1x2x16xf32, #tpu.memory_space<vmem>>, vector<1x2x16xf32>
    %154 = vector.shape_cast %153 : vector<1x2x16xf32> to vector<2x16xf32>
    %155 = vector.shape_cast %137 : vector<2x16xf32> to vector<1x2x16xf32>
    tpu.vector_store %arg6[%c0_44, %c0_45, %c0_46], %155 {strides = array<i32>} : memref<1x2x16xf32, #tpu.memory_space<vmem>>, vector<1x2x16xf32>,
    %c0_47 = arith.constant 0 : index
    %c0_48 = arith.constant 0 : index
    %156 = vector.load %arg8[%c0_47, %c0_48] : memref<2x16xf32, #tpu.memory_space<vmem>>, vector<2x16xf32>
    tpu.vector_store %arg8[%c0_47, %c0_48], %137 {strides = array<i32>} : memref<2x16xf32, #tpu.memory_space<vmem>>, vector<2x16xf32>,
    return
  }
  func.func @transform_0(%arg0: i32) -> (i32, i32, i32) {
    %c0_i32 = arith.constant 0 : i32
    %c0_i32_0 = arith.constant 0 : i32
    %c0_i32_1 = arith.constant 0 : i32
    return %arg0, %c0_i32, %c0_i32_0 : i32, i32, i32
  }
  func.func @transform_1(%arg0: i32) -> (i32, i32) {
    %c0_i32 = arith.constant 0 : i32
    %c0_i32_0 = arith.constant 0 : i32
    %c0_i32_1 = arith.constant 0 : i32
    return %c0_i32, %c0_i32_0 : i32, i32
  }
  func.func @transform_2(%arg0: i32) -> (i32, i32, i32) {
    %c0_i32 = arith.constant 0 : i32
    %c0_i32_0 = arith.constant 0 : i32
    %c0_i32_1 = arith.constant 0 : i32
    %c0_i32_2 = arith.constant 0 : i32
    return %c0_i32, %c0_i32_0, %c0_i32_1 : i32, i32, i32
  }
  func.func @transform_3(%arg0: i32) -> (i32, i32) {
    %c0_i32 = arith.constant 0 : i32
    %c0_i32_0 = arith.constant 0 : i32
    %c0_i32_1 = arith.constant 0 : i32
    return %c0_i32, %c0_i32_0 : i32, i32
  }
  func.func @transform_4(%arg0: i32) -> (i32, i32) {
    %c0_i32 = arith.constant 0 : i32
    %c0_i32_0 = arith.constant 0 : i32
    %c0_i32_1 = arith.constant 0 : i32
    return %c0_i32, %c0_i32_0 : i32, i32
  }
  func.func @transform_5(%arg0: i32) -> (i32, i32, i32) {
    %c0_i32 = arith.constant 0 : i32
    %c0_i32_0 = arith.constant 0 : i32
    %c0_i32_1 = arith.constant 0 : i32
    return %arg0, %c0_i32, %c0_i32_0 : i32, i32, i32
  }
  func.func @transform_6(%arg0: i32) -> (i32, i32, i32) {
    %c0_i32 = arith.constant 0 : i32
    %c0_i32_0 = arith.constant 0 : i32
    %c0_i32_1 = arith.constant 0 : i32
    %c0_i32_2 = arith.constant 0 : i32
    return %c0_i32, %c0_i32_0, %c0_i32_1 : i32, i32, i32
  }
}

</mosaic_0001>

<bundles_post_ra>
// kernel: write_head_sequence.1
= control target key start
LH: loop header
LB: loop body
LE: loop exit
PB: predicated region body
PF: predicated region fallthrough
CT: control target
= control target key end

     0   :  { %v683_v1 = vmov 0.0   ;;  %vm684_vm0 = vmmov 0   ;;  %vm34_vm1 = vcmask 64512   ;;  %s910_s0 = inlined_call_operand.vmem [shape: f32[1,2,32], index: 0, kind: input, shape index: {}]   ;;  %s911_s1 = inlined_call_operand.vmem [shape: f32[2,16], index: 1, kind: input, shape index: {}]   ;;  %s912_s2 = inlined_call_operand.vmem [shape: f32[2,16,8], index: 2, kind: input, shape index: {}, may-alias: {2,6}]   ;;  %s913_s3 = inlined_call_operand.vmem [shape: f32[32,30], index: 3, kind: input, shape index: {}]   ;;  %s914_s4 = inlined_call_operand.vmem [shape: f32[1,30], index: 4, kind: input, shape index: {}]   ;;  %s915_s5 = inlined_call_operand.hbm [shape: f32[1,2,16], index: 5, kind: output, shape index: {0}]   ;;  %s916_s6 = inlined_call_operand.vmem [shape: f32[2,16,8], index: 6, kind: output, shape index: {1}, may-alias: {2,6}]  }
   0x1   :  { %v48_v0 = vld [vmem:[%s913_s3 + $0x18] sm:$0xff]  ;;  %582 = vmatprep.subr.mxu0 %v683_v1  ;;  %v47_v2 = vld [vmem:[%s913_s3 + $0x10] sm:$0xff]  ;;  %590 = vmatprep.mubr.msk.f32.mxu0 %vm684_vm0, %v683_v1  ;;  %v30_v3 = vld [vmem:[%s912_s2] sm:$0xff] }
   0x2   :  { %583 = vmatpush3.msra.mxu0 %v48_v0  ;;  %35 = vst.msk [vmem:[%s916_s6] sm:$0xff] %vm34_vm1, %v30_v3 }
   0x3   :  { %12 = vsyncpa [#allocation4], 0  ;;  %584 = vmatprep.subr.mxu0 %v683_v1  ;;  %v46_v4 = vld [vmem:[%s913_s3 + $0x8] sm:$0xff]  ;;  %v45_v5 = vld [vmem:[%s913_s3] sm:$0xff]  ;;  %vm56_vm2 = vcmask 261120   ;;  %v685_v22 = vmov 8   ;;  %v170_v25 = vlaneseq }
   0x4   :  { %585 = vmatpush3.msra.mxu0 %v47_v2  ;;  %v39_v6 = vld [vmem:[%s910_s0] sm:$0x3]  ;;  %611 = vset.pattern.permute.xlu0 %v685_v22  ;;  %v686_v23 = vmov 1966171168   ;;  %vm268_vm3 = vcmask 57344   ;;  %vm145_vm4 = vcmask 99408  }
   0x5   :  { %586 = vmatprep.subr.mxu0 %v683_v1  ;;  %v168_v24 = vunpack.c.l.s4 %v686_v23  ;;  %v805_v27 = vshrl.u32 %v170_v25, 7  ;;  %v575_v28 = vld [vmem:[%s914_s4] ss:$0 sm:$0xff]  ;;  %vm28_vm5 = vcmask 123904   ;;  %s692_s7 = smov 113   ;;  %s694_s8 = smov 1  }
   0x6   :  { %587 = vmatpush3.msra.mxu0 %v46_v4  ;;  %v27_v4 = vld [vmem:[%s911_s1] sm:$0x3]  ;;  %s687_s1 = smov 118   ;;  %s695_s9 = smov 17  }
   0x7   :  { %588 = vmatprep.subr.mxu0 %v683_v1  ;;  %v169_v26 = vunpack.c.0.s8 %v168_v24  ;;  %v823_v39 = vsub.s32 0, %v805_v27  ;;  %29 = vst.msk [vmem:[#allocation2] sm:$0x3] %vm28_vm5, %v27_v4  ;;  %s696_s10 = smov 127   ;;  %s697_s11 = smov 126  }
   0x8   :  { %589 = vmatpush3.msra.mxu0 %v45_v5  ;;  %s698_s12 = smov 106   ;;  %s699_s3 = smov 114  }
   0x9   :  { %591 = vmatmul.mubr.msk.f32.vlgmr.msra.gmra.mxu0 %vm56_vm2, %v39_v6  ;;  %v761_v7 = vld [vmem:[%s916_s6] sm:$0xff]  ;;  %v31_v11 = vld [vmem:[%s912_s2 + $0x8] sm:$0xff]  ;;  %v811_v29 = vsub.s32 %v169_v26, %v805_v27  ;;  %s700_s0 = smov [#allocation3]  }
   0xa   :  { %v764_v8 = vadd.f32 1e-16, %v761_v7  ;;  %36 = vst.msk [vmem:[%s916_s6 + $0x8] sm:$0xff] %vm34_vm1, %v31_v11  ;;  %s563_s13 = sshll.u32 %s700_s0, 4  ;;  %s564_s13 = int_to_ptr.vmem [resolvable:$true] %s563_s13 }
   0xb   :  { %s661_s14 = scalar_lea.vmem %s564_s13, 32  ;;  %p666_p1 = scmp.lt.s32.totalorder %s564_s13, %s564_s13 }
   0xc   :  { %v222_v9 = vmul.f32 %v764_v8, %v764_v8  ;;  %p662_p0 = scmp.ne.s32.totalorder %s564_s13, %s661_s14  ;;  %p667_p2 = scmp.lt.s32.totalorder %s661_s14, %s661_s14 }
   0xe   :  { %v226_v10 = vsel %vm34_vm1, %v222_v9, 0.0  ;;  %p668_p3 = por %p667_p2, %p666_p1 }
   0xf   :  { %227 = vadd.xlane.f32.xlu1 %v226_v10 }
  0x10   :  { %p669_p4 = pnand %p668_p3, %p662_p0 }
  0x11   :  { %v33_v12 = vld [vmem:[%s912_s2 + $0x18] sm:$0xff]  ;;  %v786_v13 = vld [vmem:[%s916_s6 + $0x8] sm:$0xff] }
  0x12   :  { %38 = vst.msk [vmem:[%s916_s6 + $0x18] sm:$0xff] %vm34_vm1, %v33_v12  ;;  %v163_v14 = vadd.f32 1e-16, %v786_v13 }
  0x14   :  { %v223_v15 = vmul.f32 %v163_v14, %v163_v14 }
  0x16   :  { %v229_v17 = vsel %vm34_vm1, %v223_v15, 0.0 }
  0x17   :  { %230 = vadd.xlane.f32.xlu1 %v229_v17 }
  0x19   :  { %v792_v16 = vld [vmem:[%s916_s6 + $0x18] sm:$0xff]  ;;  %v32_v20 = vld [vmem:[%s912_s2 + $0x10] sm:$0xff] }
  0x1a   :  { %v165_v18 = vadd.f32 1e-16, %v792_v16  ;;  %37 = vst.msk [vmem:[%s916_s6 + $0x10] sm:$0xff] %vm34_vm1, %v32_v20 }
  0x1c   :  { %v225_v19 = vmul.f32 %v165_v18, %v165_v18 }
  0x1e   :  { %v235_v21 = vsel %vm34_vm1, %v225_v19, 0.0 }
  0x1f   :  { %236 = vadd.xlane.f32.xlu1 %v235_v21 }
  0x21   :  { %v831_v41 = vld [vmem:[%s916_s6 + $0x10] sm:$0xff] }
  0x22   :  { %v164_v46 = vadd.f32 1e-16, %v831_v41 }
  0x24   :  { %v224_v53 = vmul.f32 %v164_v46, %v164_v46 }
  0x26   :  { %v232_v56 = vsel %vm34_vm1, %v224_v53, 0.0 }
  0x98   :  { %v228_v5 = vpop.xlane.xlu1 %227 }
  0x99   :  { %vm240_vm6 = vcmp.eq.f32.partialorder %v228_v5, inf  ;;  %v243_v19 = vand.u32 2147483648, %v228_v5  ;;  %vm242_vm8 = vcmp.eq.f32.partialorder %v228_v5, 0.0 }
  0xa0   :  { %v231_v6 = vpop.xlane.xlu1 %230 }
  0xa1   :  { %vm247_vm7 = vcmp.eq.f32.partialorder %v231_v6, inf  ;;  %v250_v21 = vand.u32 2147483648, %v231_v6  ;;  %vm249_vm9 = vcmp.eq.f32.partialorder %v231_v6, 0.0 }
  0xc9   :  { %v126_v30 = vpop.f32.mrf.mxu0 }
  0xca   :  { %v813_v31 = vadd.f32 %v575_v28, %v126_v30 }
  0xcb   :  { %v592_v32 = vpop.f32.mrf.mxu0 }
  0xcc   :  { %v173_v33 = vrot.slane %v813_v31, %v811_v29  ;;  %v136_v34 = vand.u32 2147483647, %v813_v31  ;;  %v146_v58 = vsel %vm145_vm4, %v813_v31, -inf  ;;  %v135_v2 = vmax.f32 %v813_v31, 0.0 }
  0xcd   :  { %vm346_vm4 = vcmask 1041409  }
  0xce   :  { %v819_v35 = vrot.slane %v173_v33, %v811_v29  ;;  %v174_v36 = vcombine.high %v173_v33, %v173_v33  ;;  %v137_v37 = vsub.f32 0.0, %v136_v34 }
  0xd0   :  { %v191_v38 = vadd.f32 1e-16, %v819_v35  ;;  %v826_v40 = vrot.slane %v174_v36, %v811_v29  ;;  %v138_v42 = vmul.f32 1.442695, %v137_v37 }
  0xd2   :  { %v266_v43 = vmul.f32 %v191_v38, %v191_v38  ;;  %v198_v44 = vrot.slane %v191_v38, %v823_v39  ;;  %v192_v45 = vadd.f32 1e-16, %v826_v40  ;;  %619 = vpow2.f32 %v138_v42 }
  0xd4   :  { %v269_v47 = vsel %vm268_vm3, %v266_v43, 0.0  ;;  %v206_v48 = vmul.f32 %v198_v44, %v163_v14  ;;  %v267_v49 = vmul.f32 %v192_v45, %v192_v45  ;;  %v202_v50 = vrot.slane %v192_v45, %v823_v39 }
  0xd5   :  { %270 = vadd.xlane.f32.xlu0 %v269_v47  ;;  %v205_v57 = vmul.f32 %v198_v44, %v764_v8  ;;  %v237_v8 = vpop.xlane.xlu1 %236 }
  0xd6   :  { %v213_v51 = vsel %vm34_vm1, %v206_v48, 0.0  ;;  %v208_v52 = vmul.f32 %v202_v50, %v165_v18  ;;  %v272_v54 = vsel %vm268_vm3, %v267_v49, 0.0  ;;  %v207_v61 = vmul.f32 %v202_v50, %v164_v46 }
  0xd7   :  { %214 = vadd.xlane.f32.xlu1 %v213_v51  ;;  %v210_v60 = vsel %vm34_vm1, %v205_v57, 0.0  ;;  %vm261_vm10 = vcmp.eq.f32.partialorder %v237_v8, inf  ;;  %v264_v33 = vand.u32 2147483648, %v237_v8  ;;  %vm263_vm13 = vcmp.eq.f32.partialorder %v237_v8, 0.0 }
  0xd8   :  { %v219_v55 = vsel %vm34_vm1, %v208_v52, 0.0  ;;  %v216_v63 = vsel %vm34_vm1, %v207_v61, 0.0  ;;  %vm335_vm3 = vcmask 130112  }
  0xd9   :  { %273 = vadd.xlane.f32.xlu0 %v272_v54 }
  0xdb   :  { %220 = vadd.xlane.f32.xlu1 %v219_v55 }
  0xdd   :  { %233 = vadd.xlane.f32.xlu0 %v232_v56 }
  0xdf   :  { %147 = vmax.xlane.f32.xlu1 %v146_v58  ;;  %v620_v59 = vpop.eup %619 }
  0xe0   :  { %v140_v62 = vadd.f32 1.0, %v620_v59 }
  0xe1   :  { %211 = vadd.xlane.f32.xlu0 %v210_v60 }
  0xe2   :  { %621 = vlog2.f32 %v140_v62 }
  0xe3   :  { %623 = vrsqrt.f32 %v228_v5 }
  0xe4   :  { %625 = vrsqrt.f32 %v231_v6 }
  0xe5   :  { %217 = vadd.xlane.f32.xlu0 %v216_v63  ;;  %627 = vrsqrt.f32 %v237_v8 }
  0xef   :  { %v622_v0 = vpop.eup %621 }
  0xf0   :  { %v142_v1 = vmul.f32 0.6931472, %v622_v0  ;;  %v624_v11 = vpop.eup %623  ;;  %v325_v0 = vand.u32 127, %v170_v25 }
  0xf1   :  { %v626_v12 = vpop.eup %625  ;;  %v239_v15 = vmul.f32 %v624_v11, %v228_v5 }
  0xf2   :  { %v847_v3 = vadd.f32 %v142_v1, %v135_v2  ;;  %v246_v17 = vmul.f32 %v626_v12, %v231_v6  ;;  %v628_v18 = vpop.eup %627  ;;  %v330_v2 = vadd.s32 4294967288, %v325_v0  ;;  %v328_v11 = vsub.s32 %v325_v0, %v805_v27 }
  0xf3   :  { %v241_v20 = vsel %vm240_vm6, %v228_v5, %v239_v15  ;;  %v260_v24 = vmul.f32 %v628_v18, %v237_v8  ;;  %vm156_vm6 = vcmask 17408  }
  0xf4   :  { %v248_v23 = vsel %vm247_vm7, %v231_v6, %v246_v17  ;;  %v244_v28 = vsel %vm242_vm8, %v243_v19, %v241_v20  ;;  %vm386_vm7 = vcmask 7168   ;;  %vm388_vm8 = vcmask 138240  }
  0xf5   :  { %v251_v32 = vsel %vm249_vm9, %v250_v21, %v248_v23  ;;  %v262_v37 = vsel %vm261_vm10, %v237_v8, %v260_v24  ;;  %v289_v44 = vmax.f32 %v244_v28, 1e-08 }
  0xf6   :  { %v290_v45 = vmax.f32 %v251_v32, 1e-08  ;;  %v265_v47 = vsel %vm263_vm13, %v264_v33, %v262_v37 }
  0xf7   :  { %v292_v56 = vmax.f32 %v265_v47, 1e-08 }
  0xfb   :  { %317 = vperm.xlu0 %611, %v847_v3  }
 0x15e   :  { %v271_v9 = vpop.xlane.xlu0 %270 }
 0x15f   :  { %629 = vrsqrt.f32 %v271_v9  ;;  %vm277_vm11 = vcmp.eq.f32.partialorder %v271_v9, inf  ;;  %v280_v30 = vand.u32 2147483648, %v271_v9  ;;  %vm279_vm12 = vcmp.eq.f32.partialorder %v271_v9, 0.0 }
 0x160   :  { %v215_v1 = vpop.xlane.xlu1 %214 }
 0x162   :  { %v274_v10 = vpop.xlane.xlu0 %273 }
 0x163   :  { %631 = vrsqrt.f32 %v274_v10  ;;  %vm284_vm14 = vcmp.eq.f32.partialorder %v274_v10, inf  ;;  %v287_v46 = vand.u32 2147483648, %v274_v10  ;;  %vm286_vm15 = vcmp.eq.f32.partialorder %v274_v10, 0.0 }
 0x164   :  { %v221_v8 = vpop.xlane.xlu1 %220 }
 0x166   :  { %v234_v14 = vpop.xlane.xlu0 %233 }
 0x167   :  { %633 = vrsqrt.f32 %v234_v14  ;;  %vm254_vm0 = vcmp.eq.f32.partialorder %v234_v14, inf  ;;  %v257_v57 = vand.u32 2147483648, %v234_v14  ;;  %vm256_vm2 = vcmp.eq.f32.partialorder %v234_v14, 0.0 }
 0x168   :  { %v148_v25 = vpop.xlane.xlu1 %147 }
 0x169   :  { %v149_v24 = vsub.f32 %v813_v31, %v148_v25 }
 0x16a   :  { %v212_v5 = vpop.xlane.xlu0 %211 }
 0x16c   :  { %v630_v22 = vpop.eup %629 }
 0x16d   :  { %v276_v26 = vmul.f32 %v630_v22, %v271_v9 }
 0x16e   :  { %v218_v18 = vpop.xlane.xlu0 %217 }
 0x16f   :  { %v278_v34 = vsel %vm277_vm11, %v271_v9, %v276_v26  ;;  %v333_v9 = vsub.s32 %v330_v2, %v805_v27 }
 0x170   :  { %v632_v36 = vpop.eup %631  ;;  %v281_v38 = vsel %vm279_vm12, %v280_v30, %v278_v34  ;;  %v150_v34 = vmul.f32 1.442695, %v149_v24 }
 0x171   :  { %v293_v42 = vmax.f32 %v281_v38, 1e-08  ;;  %v283_v43 = vmul.f32 %v632_v36, %v274_v10  ;;  %v688_v38 = vmov 9  }
 0x172   :  { %613 = vset.pattern.permute.xlu0 %v688_v38  ;;  %612 = vset.pattern.permute.xlu1 %v688_v38 }
 0x173   :  { %v298_v48 = vrot.slane %v293_v42, %v823_v39  ;;  %v285_v49 = vsel %vm284_vm14, %v274_v10, %v283_v43  ;;  %v130_v42 = vsub.f32 0.0, %v813_v31 }
 0x174   :  { %v634_v50 = vpop.eup %633  ;;  %v288_v51 = vsel %vm286_vm15, %v287_v46, %v285_v49 }
 0x175   :  { %v304_v52 = vmul.f32 %v298_v48, %v290_v45  ;;  %v294_v53 = vmax.f32 %v288_v51, 1e-08  ;;  %v253_v54 = vmul.f32 %v634_v50, %v234_v14  ;;  %v303_v55 = vmul.f32 %v298_v48, %v289_v44 }
 0x176   :  { %v318_v32 = vpop.permute.xlu0 %317  ;;  %v131_v43 = vmul.f32 1.442695, %v130_v42 }
 0x177   :  { %635 = vrcp.f32 %v304_v52  ;;  %v302_v58 = vrot.slane %v294_v53, %v823_v39  ;;  %v255_v59 = vsel %vm254_vm0, %v234_v14, %v253_v54  ;;  %v689_v54 = vmov 11  }
 0x178   :  { %v258_v60 = vsel %vm256_vm2, %v257_v57, %v255_v59  ;;  %637 = vrcp.f32 %v303_v55  ;;  %v690_v59 = vmov 12  }
 0x179   :  { %v306_v61 = vmul.f32 %v302_v58, %v292_v56  ;;  %v291_v62 = vmax.f32 %v258_v60, 1e-08  ;;  %v691_v60 = vmov 10  }
 0x17b   :  { %639 = vrcp.f32 %v306_v61  ;;  %v305_v63 = vmul.f32 %v302_v58, %v291_v62 }
 0x17d   :  { %641 = vrcp.f32 %v305_v63  ;;  %v40_v63 = vld [vmem:[#allocation2] sm:$0x3] }
 0x17e   :  { %643 = vpow2.f32 %v150_v34 }
 0x17f   :  { %645 = vpow2.f32 %v131_v43 }
 0x184   :  { %v636_v4 = vpop.eup %635 }
 0x185   :  { %v638_v6 = vpop.eup %637  ;;  %v312_v10 = vmul.f32 %v636_v4, %v215_v1 }
 0x186   :  { %v311_v12 = vmul.f32 %v638_v6, %v212_v5  ;;  %v693_v6 = vmov 13  }
 0x187   :  { %v334_v19 = vrot.slane %v312_v10, %v333_v9 }
 0x188   :  { %v640_v14 = vpop.eup %639  ;;  %v329_v20 = vrot.slane %v311_v12, %v328_v11 }
 0x189   :  { %v314_v15 = vmul.f32 %v640_v14, %v221_v8 }
 0x18a   :  { %v642_v17 = vpop.eup %641  ;;  %v336_v26 = vsel %vm335_vm3, %v334_v19, %v329_v20  ;;  %v144_v19 = vadd.f32 1.0, %v847_v3 }
 0x18b   :  { %v313_v21 = vmul.f32 %v642_v17, %v218_v18  ;;  %v344_v22 = vrot.slane %v314_v15, %v333_v9  ;;  %v644_v37 = vpop.eup %643 }
 0x18c   :  { %v646_v46 = vpop.eup %645 }
 0x18d   :  { %v340_v23 = vrot.slane %v313_v21, %v328_v11  ;;  %v133_v50 = vadd.f32 1.0, %v646_v46  ;;  %v448_v46 = vsub.s32 1, %v805_v27 }
 0x18f   :  { %v345_v28 = vsel %vm335_vm3, %v344_v22, %v340_v23 }
 0x190   :  { %v347_v30 = vsel %vm346_vm4, %v345_v28, %v336_v26 }
 0x191   :  { %v349_v33 = vmul.f32 %v347_v30, %v318_v32 }
 0x193   :  { %v351_v36 = vsel %vm28_vm5, %v349_v33, -inf }
 0x194   :  { %352 = vmax.xlane.f32.xlu1 %v351_v36 }
 0x1a5   :  { %153 = vrot.lane.b32.xlu1 %v644_v37, %s687_s1 }
 0x21d   :  { %v353_v44 = vpop.xlane.xlu1 %352 }
 0x21e   :  { %v354_v45 = vsub.f32 %v349_v33, %v353_v44 }
 0x220   :  { %v355_v47 = vmul.f32 1.442695, %v354_v45 }
 0x221   :  { %v154_v48 = vpop.permute.xlu1 %153 }
 0x222   :  { %647 = vpow2.f32 %v355_v47  ;;  %v157_v49 = vsel %vm156_vm6, %v154_v48, 0.0 }
 0x223   :  { %158 = vadd.xlane.f32.xlu0 %v157_v49  ;;  %649 = vrcp.f32 %v133_v50  ;;  %v496_v49 = vrot.slane %v819_v35, %v823_v39 }
 0x22f   :  { %v648_v51 = vpop.eup %647 }
 0x230   :  { %v357_v52 = vsel %vm28_vm5, %v648_v51, 0.0  ;;  %v863_v53 = vpop.eup %649 }
 0x231   :  { %358 = vadd.xlane.f32.xlu1 %v357_v52  ;;  %v368_v31 = vsub.f32 1.0, %v863_v53  ;;  %v463_v48 = vrot.slane %v863_v53, %v811_v29 }
 0x233   :  { %v471_v52 = vrot.slane %v463_v48, %v811_v29 }
 0x235   :  { %v482_v27 = vrot.slane %v471_v52, %v823_v39 }
 0x239   :  { %371 = vperm.xlu0 %613, %v368_v31  }
 0x23d   :  { %618 = vset.pattern.permute.xlu0 %v693_v6 }
 0x242   :  { %364 = vperm.xlu1 %612, %v863_v53   ;;  %v500_v53 = vrot.slane %v826_v40, %v823_v39 }
 0x246   :  { %614 = vset.pattern.permute.xlu1 %v689_v54 }
 0x2ac   :  { %v159_v55 = vpop.xlane.xlu0 %158 }
 0x2ad   :  { %651 = vrcp.f32 %v159_v55  ;;  %v464_v55 = vcombine.high %v463_v48, %v463_v48 }
 0x2b4   :  { %v372_v62 = vpop.permute.xlu0 %371 }
 0x2b5   :  { %v374_v2 = vmul.f32 %v372_v62, %v40_v63 }
 0x2ba   :  { %v652_v56 = vpop.eup %651  ;;  %v359_v57 = vpop.xlane.xlu1 %358 }
 0x2bb   :  { %653 = vrcp.f32 %v359_v57  ;;  %v161_v58 = vmul.f32 %v652_v56, %v644_v37 }
 0x2bd   :  { %397 = vperm.xlu1 %614, %v161_v58  }
 0x2be   :  { %v365_v1 = vpop.permute.xlu1 %364 }
 0x2c1   :  { %615 = vset.pattern.permute.xlu1 %v690_v59 }
 0x2c2   :  { %407 = vperm.xlu1 %615, %v161_v58  }
 0x2c6   :  { %616 = vset.pattern.permute.xlu1 %v691_v60 }
 0x2c8   :  { %v654_v61 = vpop.eup %653 }
 0x2c9   :  { %v361_v0 = vmul.f32 %v654_v61, %v648_v51 }
 0x2cb   :  { %v367_v4 = vmul.f32 %v365_v1, %v361_v0 }
 0x2cd   :  { %v375_v5 = vadd.f32 %v374_v2, %v367_v4 }
 0x2cf   :  { %377 = vrot.lane.b32.xlu1 %v375_v5, %s692_s7 }
 0x2d3   :  { %380 = vrot.lane.b32.xlu1 %v375_v5, %s694_s8 }
 0x2d7   :  { %383 = vrot.lane.b32.xlu1 %v375_v5, %s695_s9 }
 0x2db   :  { %392 = vperm.xlu1 %616, %v161_v58   ;;  %v478_v58 = vrot.slane %v464_v55, %v811_v29 }
 0x2dd   :  { %v486_v61 = vrot.slane %v478_v58, %v823_v39 }
 0x2df   :  { %617 = vset.pattern.permute.xlu1 %v693_v6 }
 0x338   :  { %v398_v8 = vpop.permute.xlu1 %397 }
 0x33d   :  { %v408_v9 = vpop.permute.xlu1 %407 }
 0x341   :  { %v378_v10 = vpop.permute.xlu1 %377 }
 0x345   :  { %v381_v11 = vpop.permute.xlu1 %380 }
 0x346   :  { %v387_v12 = vsel %vm386_vm7, %v378_v10, %v381_v11 }
 0x349   :  { %v384_v14 = vpop.permute.xlu1 %383 }
 0x34a   :  { %v389_v15 = vsel %vm388_vm8, %v387_v12, %v384_v14 }
 0x34b   :  { %v400_v17 = vmul.f32 %v398_v8, %v389_v15  ;;  %v410_v18 = vmul.f32 %v408_v9, %v389_v15 }
 0x34d   :  { %402 = vrot.lane.b32.xlu1 %v400_v17, %s696_s10 }
 0x351   :  { %412 = vrot.lane.b32.xlu1 %v410_v18, %s697_s11 }
 0x355   :  { %422 = vperm.xlu1 %617, %v144_v19  }
 0x356   :  { %v393_v20 = vpop.permute.xlu1 %392 }
 0x357   :  { %v395_v25 = vmul.f32 %v393_v20, %v389_v15 }
 0x3bf   :  { %v403_v21 = vpop.permute.xlu1 %402 }
 0x3c0   :  { %v405_v22 = vadd.f32 %v403_v21, %v395_v25 }
 0x3c3   :  { %v413_v23 = vpop.permute.xlu1 %412 }
 0x3c4   :  { %v415_v24 = vadd.f32 %v413_v23, %v405_v22 }
 0x3c6   :  { %v417_v26 = vmax.f32 %v415_v24, 1e-38  ;;  %vm416_vm9 = vcmp.gt.f32.partialorder %v415_v24, 0.0 }
 0x3c8   :  { %655 = vlog2.f32 %v417_v26 }
 0x3d0   :  { %v423_v32 = vpop.permute.xlu1 %422 }
 0x3d5   :  { %v656_v28 = vpop.eup %655 }
 0x3d6   :  { %v419_v30 = vmul.f32 0.6931472, %v656_v28 }
 0x3d8   :  { %v425_v33 = vmul.f32 %v423_v32, %v419_v30 }
 0x3da   :  { %v426_v34 = vmul.f32 1.442695, %v425_v33 }
 0x3dc   :  { %657 = vpow2.f32 %v426_v34 }
 0x3e9   :  { %v658_v36 = vpop.eup %657 }
 0x3ea   :  { %v428_v37 = vsel %vm416_vm9, %v658_v36, 0.0 }
 0x3eb   :  { %v429_v3 = vsel %vm28_vm5, %v428_v37, 0.0 }
 0x3ec   :  { %430 = vadd.xlane.f32.xlu1 %v429_v3 }
 0x475   :  { %v431_v38 = vpop.xlane.xlu1 %430 }
 0x476   :  { %v432_v42 = vadd.f32 1e-16, %v431_v38 }
 0x478   :  { %659 = vrcp.f32 %v432_v42 }
 0x485   :  { %v660_v43 = vpop.eup %659 }
 0x486   :  { %v434_v44 = vmul.f32 %v660_v43, %v428_v37 }
 0x488   :  { %v438_v45 = vrot.slane %v434_v44, %v823_v39  ;;  %556 = vst.msk [vmem:[#allocation2] sm:$0x3] %vm28_vm5, %v434_v44  ;;  %555 = vst.msk [vmem:[#allocation3] sm:$0x3] %vm28_vm5, %v434_v44  ;;  %v449_v47 = vrot.slane %v434_v44, %v448_v46 }
 0x48a   :  { %440 = vbcast.lane.b32.xlu0 %v438_v45, 256 }
 0x48e   :  { %444 = vbcast.lane.b32.xlu0 %v438_v45, 264 }
 0x492   :  { %451 = vbcast.lane.b32.xlu0 %v449_v47, 256 }
 0x496   :  { %455 = vbcast.lane.b32.xlu0 %v449_v47, 264 }
 0x4fc   :  { %v441_v50 = vpop.permute.xlu0 %440 }
 0x4fd   :  { %v503_v51 = vmul.f32 %v496_v49, %v441_v50  ;;  %v489_v57 = vmul.f32 %v482_v27, %v441_v50 }
 0x4ff   :  { %535 = vrot.lane.b32.xlu1 %v503_v51, %s698_s12  ;;  %v507_v59 = vsub.f32 1.0, %v489_v57 }
 0x500   :  { %v445_v31 = vpop.permute.xlu0 %444 }
 0x501   :  { %v504_v54 = vmul.f32 %v496_v49, %v445_v31  ;;  %v490_v60 = vmul.f32 %v482_v27, %v445_v31 }
 0x503   :  { %537 = vrot.lane.b32.xlu0 %v504_v54, %s698_s12  ;;  %v508_v62 = vsub.f32 1.0, %v490_v60 }
 0x504   :  { %v452_v56 = vpop.permute.xlu0 %451 }
 0x505   :  { %v505_v35 = vmul.f32 %v500_v53, %v452_v56  ;;  %v491_v63 = vmul.f32 %v486_v61, %v452_v56 }
 0x507   :  { %539 = vrot.lane.b32.xlu0 %v505_v35, %s698_s12  ;;  %v509_v40 = vsub.f32 1.0, %v491_v63 }
 0x508   :  { %v456_v0 = vpop.permute.xlu0 %455 }
 0x509   :  { %v492_v1 = vmul.f32 %v486_v61, %v456_v0 }
 0x50b   :  { %515 = vrot.lane.b32.xlu0 %v507_v59, %s699_s3 }
 0x50f   :  { %517 = vrot.lane.b32.xlu0 %v508_v62, %s699_s3 }
 0x510   :  { %672 = shalt.err (!%p669_p4)
}
 0x511   :  { %566 = dma.vmem_to_hbm [thread:$0]  %s564_s13, 32, %s915_s5, [#allocation4]   ;;  %v510_v29 = vsub.f32 1.0, %v492_v1  ;;  %v506_v39 = vmul.f32 %v500_v53, %v456_v0 }
 0x513   :  { %519 = vrot.lane.b32.xlu0 %v509_v40, %s699_s3 }
 0x517   :  { %521 = vrot.lane.b32.xlu0 %v510_v29, %s699_s3 }
 0x51b   :  { %541 = vrot.lane.b32.xlu0 %v506_v39, %s698_s12 }
 0x571   :  { %v536_v8 = vpop.permute.xlu1 %535 }
 0x575   :  { %v538_v2 = vpop.permute.xlu0 %537 }
 0x579   :  { %v540_v4 = vpop.permute.xlu0 %539 }
 0x57d   :  { %v516_v5 = vpop.permute.xlu0 %515 }
 0x57e   :  { %v527_v6 = vmul.f32 %v516_v5, %v761_v7 }
 0x580   :  { %v547_v9 = vadd.f32 %v536_v8, %v527_v6 }
 0x581   :  { %v518_v10 = vpop.permute.xlu0 %517 }
 0x582   :  { %551 = vst.msk [vmem:[%s916_s6] sm:$0xff] %vm34_vm1, %v547_v9  ;;  %v528_v11 = vmul.f32 %v518_v10, %v786_v13 }
 0x584   :  { %v548_v12 = vadd.f32 %v538_v2, %v528_v11 }
 0x585   :  { %v520_v14 = vpop.permute.xlu0 %519 }
 0x586   :  { %552 = vst.msk [vmem:[%s916_s6 + $0x8] sm:$0xff] %vm34_vm1, %v548_v12  ;;  %v529_v15 = vmul.f32 %v520_v14, %v831_v41 }
 0x588   :  { %v549_v7 = vadd.f32 %v540_v4, %v529_v15 }
 0x589   :  { %v522_v17 = vpop.permute.xlu0 %521 }
 0x58a   :  { %553 = vst.msk [vmem:[%s916_s6 + $0x10] sm:$0xff] %vm34_vm1, %v549_v7  ;;  %v530_v18 = vmul.f32 %v522_v17, %v792_v16 }
 0x58d   :  { %v542_v19 = vpop.permute.xlu0 %541 }
 0x58e   :  { %v550_v13 = vadd.f32 %v542_v19, %v530_v18 }
 0x590   :  { %554 = vst.msk [vmem:[%s916_s6 + $0x18] sm:$0xff] %vm34_vm1, %v550_v13 }
 0x591   :  { %681 = dma.done.wait [#allocation4], 32  }
 0x592   :  { %682 = vsyncadd [#allocation4], 4294967264 }
 0x593   :  { %574 = vsyncpa [#allocation4], 1 }

</bundles_post_ra>
